<compile_context>
chip_gen: v5e
topology: v5e:2x2
jax: 0.10.0
libtpu: 0.0.40
codegen_flags: <defaults>
</compile_context>

<pallas_src>
import functools

import jax
import jax.numpy as jnp
from jax.experimental import pallas as pl
from jax.experimental.pallas import tpu as pltpu


def _round_up(x, m):
    return (x + m - 1) // m * m


def _ceil_div(a, b):
    return -(-a // b)


@functools.lru_cache(maxsize=1)
def _tpu_caps():
    """Per-generation (vmem_budget_bytes, batch_tile_cap).

    v5e/v6e have 128 MiB VMEM per TensorCore -> large budget / 1024-row tiles.
    v7x has 64 MiB (and 2 TCs) -> conservative 40 MiB budget, 512-row tiles.
    Unknown hardware gets the conservative setting.
    """
    kind = ""
    try:
        kind = jax.devices()[0].device_kind.lower()
    except Exception:
        pass
    if "v5" in kind or "v6" in kind:
        return 96 * 2**20, 1024
    return 40 * 2**20, 512


# --------------------------------------------------------------------------- #
# Generic kernel: o = act(x @ w + b) on one (bt, ot) tile.
# --------------------------------------------------------------------------- #
def _affine_act_kernel(x_ref, w_ref, b_ref, o_ref, *, n_tanh, out_tile):
    """n_tanh=None -> identity (prediction head).
    n_tanh=int   -> tanh on global output columns < n_tanh, sigmoid on the rest
                    (fused reconstruction split; both hit the otherwise-idle EUP)."""
    y = jnp.dot(x_ref[...], w_ref[...], preferred_element_type=jnp.float32)
    y = y + b_ref[...]
    if n_tanh is not None:
        col = (pl.program_id(0) * out_tile
               + jax.lax.broadcasted_iota(jnp.int32, y.shape, 1))
        sig = 1.0 / (1.0 + jnp.exp(-y))          # hand-rolled sigmoid (EUP exp)
        y = jnp.where(col < n_tanh, jnp.tanh(y), sig)
    o_ref[...] = y.astype(o_ref.dtype)


def _tiled_affine(x, w_full, b_row, out_valid, *, n_tanh=None,
                  compute_dtype=jnp.float32, use_pallas=None, out_dtype=None):
    """y = act(x @ w_full + b_row)[:, :out_valid].

    x: (B, K); w_full: (K, Np) with Np % 128 == 0 (lane-dense); b_row: (1, Np).
    """
    B, K = x.shape
    Kw, Np = w_full.shape
    assert Kw == K and Np % 128 == 0 and b_row.shape == (1, Np)
    out_dtype = jnp.dtype(out_dtype or x.dtype)
    itemsize = jnp.dtype(compute_dtype).itemsize

    def xla_path():
        y = jnp.dot(x.astype(compute_dtype), w_full.astype(compute_dtype),
                    preferred_element_type=jnp.float32) + b_row
        if n_tanh is not None:
            col = jnp.arange(Np)[None, :]
            y = jnp.where(col < n_tanh, jnp.tanh(y), jax.nn.sigmoid(y))
        return y[:, :out_valid].astype(out_dtype)

    # Small-shape fast path: pallas_call fixed cost (+ ~0.35us/step) and a K<128
    # contraction (MXU under-utilized) can only lose to plain XLA here.
    if use_pallas is None:
        use_pallas = K >= 128 and B * K * Np >= (1 << 20)
    if not use_pallas:
        return xla_path()

    vmem_budget, bt_cap = _tpu_caps()

    # Batch tiling: near-minimal padding; >= 2 tiles so the "parallel" batch axis
    # can shard across v7x's two TensorCores (harmless elsewhere).
    min_tiles = 2 if B >= 16 else 1
    n_bt = max(_ceil_div(B, bt_cap), min_tiles)
    bt = _round_up(_ceil_div(B, n_bt), 8)

    def vmem_need(bt_, ot_):
        # double-buffered x / w / b input blocks + out block
        return 2 * (bt_ * K * itemsize + K * ot_ * itemsize + ot_ * 4
                    + bt_ * ot_ * out_dtype.itemsize)

    # Output tiling: widest lane-dense divisor of Np that fits the VMEM budget
    # (fewer output tiles => less re-streaming of the x tiles).
    ot_cands = [d for d in range(Np, 0, -128) if Np % d == 0]
    ot = next((d for d in ot_cands if vmem_need(bt, d) <= vmem_budget), ot_cands[-1])
    while vmem_need(bt, ot) > vmem_budget and bt > 8:
        bt = max(8, _round_up(bt // 2, 8))
    if vmem_need(bt, ot) > vmem_budget:
        # TODO(synk): add a K-reduction grid axis (f32 VMEM accumulator) for very
        # large K; until then fall back to XLA rather than blow VMEM.
        return xla_path()

    n_bt = _ceil_div(B, bt)
    Bp = n_bt * bt
    n_ot = Np // ot

    x_c = x.astype(compute_dtype)
    if Bp != B:
        x_c = jnp.pad(x_c, ((0, Bp - B), (0, 0)))

    kernel = functools.partial(_affine_act_kernel, n_tanh=n_tanh, out_tile=ot)
    out = pl.pallas_call(
        kernel,
        out_shape=jax.ShapeDtypeStruct((Bp, Np), out_dtype),
        grid_spec=pltpu.PrefetchScalarGridSpec(
            num_scalar_prefetch=0,
            # Out-tile axis j is OUTERMOST: each (K, ot) weight slab is DMA'd once
            # and stays resident across all batch tiles (inner axis), instead of
            # being re-fetched per (i, j) step.
            grid=(n_ot, n_bt),
            in_specs=[
                pl.BlockSpec((bt, K), lambda j, i: (i, 0)),
                pl.BlockSpec((K, ot), lambda j, i: (0, j)),
                pl.BlockSpec((1, ot), lambda j, i: (0, j)),
            ],
            out_specs=pl.BlockSpec((bt, ot), lambda j, i: (i, j)),
        ),
        compiler_params=pltpu.CompilerParams(
            dimension_semantics=("parallel", "parallel"),
            vmem_limit_bytes=int(min(vmem_budget + (16 << 20), 100 * 2**20)),
        ),
        cost_estimate=pl.CostEstimate(
            flops=2 * Bp * K * Np,
            bytes_accessed=(n_ot * Bp * K + K * Np) * itemsize
                           + Np * 4 + Bp * Np * out_dtype.itemsize,
            transcendentals=(2 * Bp * Np if n_tanh is not None else 0),
        ),
    )(x_c, w_full.astype(compute_dtype), b_row.astype(jnp.float32))
    return out[:B, :out_valid]


# --------------------------------------------------------------------------- #
# Parameter-only pre-folds (hoist / cache these for inference with fixed params)
# --------------------------------------------------------------------------- #
def fold_prediction_head_params(w, b, vars_pos, in_features, adj_mat=None,
                                compute_dtype=jnp.float32):
    """Fold the optional (w * adj_mat) mask and the x[:, vars_pos] gather into a
    lane-dense padded weight slab: x[:, vars_pos] @ w_eff == x @ W_full."""
    in_f, out_f = w.shape
    w_eff = w if adj_mat is None else w * adj_mat.astype(w.dtype)
    out_pad = _round_up(out_f, 128)
    w_pad = jnp.pad(w_eff.astype(compute_dtype), ((0, 0), (0, out_pad - out_f)))
    idx = jnp.asarray(vars_pos, dtype=jnp.int32)
    # scatter-add handles duplicate positions; out-of-range positions are dropped
    # (only reachable in a configuration PyTorch itself would reject with an error).
    w_full = jnp.zeros((in_features, out_pad), compute_dtype).at[idx].add(w_pad)
    b_row = jnp.pad(b.astype(jnp.float32), (0, out_pad - out_f)).reshape(1, -1)
    return w_full, b_row, out_f


def fold_gcn_params(gc_w, gc_b, adj_norm, vars_pos, compute_dtype=jnp.float32):
    """Fold the eval-mode GraphConvolutionLayer + reconstruction reorder into one
    affine map so x_hat = act(x @ M + c):
        recon = x + (x @ w + b) @ adj_norm = x @ (w @ adj_norm + I) + b @ adj_norm
        M = (w @ adj_norm + I)[:, vars_pos],  c = (b @ adj_norm)[vars_pos]
    Parameter-only (F x F) work; halves per-batch MXU passes and removes the
    recon HBM round trip and the concat copy."""
    f = gc_w.shape[0]
    m_full = (jnp.dot(gc_w, adj_norm, precision=jax.lax.Precision.HIGHEST)
              + jnp.eye(f, dtype=gc_w.dtype))
    c_full = jnp.dot(gc_b, adj_norm, precision=jax.lax.Precision.HIGHEST)
    idx = jnp.asarray(vars_pos, dtype=jnp.int32)
    v = len(vars_pos)
    vp = _round_up(v, 128)
    m_g = jnp.pad(m_full[:, idx].astype(compute_dtype), ((0, 0), (0, vp - v)))
    c_g = jnp.pad(c_full[idx].astype(jnp.float32), (0, vp - v)).reshape(1, -1)
    return m_g, c_g, v


# --------------------------------------------------------------------------- #
# Module-level wrappers
# --------------------------------------------------------------------------- #
@functools.partial(jax.jit,
                   static_argnames=("vars_pos", "compute_dtype", "use_pallas"))
def prediction_head_forward(x, w, b, vars_pos, adj_mat=None,
                            compute_dtype=jnp.float32, use_pallas=None):
    """PredictionHead.forward: x[:, vars_pos] @ (w [* adj_mat]) + b."""
    w_full, b_row, out_f = fold_prediction_head_params(
        w, b, tuple(vars_pos), x.shape[1], adj_mat, compute_dtype)
    return _tiled_affine(x, w_full, b_row, out_f,
                         compute_dtype=compute_dtype, use_pallas=use_pallas)


def graph_sampling_logits(emb1, emb2, theta1, theta2, alpha):
    # Parameter-only compute (num_features x emb_dim): plain JAX, no kernel pay-off.
    e1 = alpha * jnp.tanh(jnp.dot(emb1, theta1.T, precision=jax.lax.Precision.HIGHEST))
    e2 = alpha * jnp.tanh(jnp.dot(emb2, theta2.T, precision=jax.lax.Precision.HIGHEST))
    return jnp.dot(e1, e2.T, precision=jax.lax.Precision.HIGHEST)


def make_graph_imputer_forward(params, numeric_vars_pos, cat_vars_pos,
                               compute_dtype=jnp.float32, use_pallas=None):
    """Build a jitted eval-mode GraphImputer.forward (num_layers=1) for FIXED
    params.  All parameter-only work (graph sampling, sigmoid, adjacency
    normalization, GCN/head weight folding + lane padding) is hoisted out of the
    per-batch call path."""
    numeric_vars_pos = tuple(numeric_vars_pos)
    cat_vars_pos = tuple(cat_vars_pos)
    vars_pos = numeric_vars_pos + cat_vars_pos
    n_num, n_cat = len(numeric_vars_pos), len(cat_vars_pos)
    assert n_num + n_cat > 0

    logits = graph_sampling_logits(params["emb1"], params["emb2"],
                                   params["theta1"], params["theta2"],
                                   params["alpha"])
    adj_mat = jax.nn.sigmoid(logits)
    adj_norm = adj_mat / adj_mat.sum(axis=0, keepdims=True)

    m_g, c_g, v = fold_gcn_params(params["gc_w"], params["gc_b"], adj_norm,
                                  vars_pos, compute_dtype)
    # Eval-mode head: PyTorch calls prediction_head(batch_x_hat), whose forward
    # re-indexes with the ORIGINAL vars_pos feature positions; mirrored verbatim.
    w_full, b_row, out_f = fold_prediction_head_params(
        params["ph_w"], params["ph_b"], vars_pos, v, None, compute_dtype)

    @jax.jit
    def forward(x):
        # TODO(synk): SoftImpute initial imputation (CPU iterative SVD) omitted;
        # x is assumed already imputed.
        x_hat = _tiled_affine(x, m_g, c_g, v, n_tanh=n_num,
                              compute_dtype=compute_dtype, use_pallas=use_pallas)
        y_hat = _tiled_affine(x_hat, w_full, b_row, out_f,
                              compute_dtype=compute_dtype, use_pallas=use_pallas)
        num = x_hat[:, :n_num] if n_num > 0 else None
        cat = x_hat[:, n_num:] if n_cat > 0 else None
        return {"x_recon_num": num, "x_recon_cat": cat, "adj_mat": adj_mat,
                "x_imputed": x_hat, "y_hat": y_hat}

    return forward


def xavier_normal(key, shape, dtype=jnp.float32):
    fan_in, fan_out = shape
    std = (2.0 / (fan_in + fan_out)) ** 0.5
    return std * jax.random.normal(key, shape, dtype=dtype)


if __name__ == "__main__":
    # Make XLA f32 matmuls true f32 so the pure-JAX reference is a tight oracle.
    jax.config.update("jax_default_matmul_precision", "highest")

    key = jax.random.PRNGKey(0)
    ks = jax.random.split(key, 8)

    batch = 32
    num_features = 8
    emb_dim = 16
    num_labels = 4
    numeric_vars_pos = (0, 1, 2, 3)
    cat_vars_pos = (4, 5, 6, 7)
    vars_pos = numeric_vars_pos + cat_vars_pos
    alpha = 3.0

    params = {
        "emb1": jax.random.normal(ks[0], (num_features, emb_dim), jnp.float32),
        "emb2": jax.random.normal(ks[1], (num_features, emb_dim), jnp.float32),
        "theta1": 0.3 * jax.random.normal(ks[2], (emb_dim, emb_dim), jnp.float32),
        "theta2": 0.3 * jax.random.normal(ks[3], (emb_dim, emb_dim), jnp.float32),
        "gc_w": xavier_normal(ks[4], (num_features, num_features)),
        "gc_b": jnp.zeros((num_features,), jnp.float32),
        "ph_w": xavier_normal(ks[5], (num_features, num_labels)),
        "ph_b": jnp.zeros((num_labels,), jnp.float32),
        "alpha": alpha,
    }

    x = jax.random.normal(ks[6], (batch, num_features), jnp.float32)
    adj_mask = (jax.random.uniform(ks[7], (num_features, num_labels)) > 0.5
                ).astype(jnp.float32)

    # Forced-Pallas path (exercise the kernels even at these tiny demo sizes)...
    fwd_pallas = make_graph_imputer_forward(params, numeric_vars_pos, cat_vars_pos,
                                            use_pallas=True)
    out = fwd_pallas(x)
    y_masked = prediction_head_forward(x, params["ph_w"], params["ph_b"], vars_pos,
                                       adj_mask, use_pallas=True)
    # ...and the auto path (small-shape XLA fast path at these sizes).
    fwd_auto = make_graph_imputer_forward(params, numeric_vars_pos, cat_vars_pos)
    out_auto = fwd_auto(x)
    jax.block_until_ready((out, y_masked, out_auto))

    # ---- pure-JAX reference (mirrors the PyTorch forward) ----
    e1 = alpha * jnp.tanh(params["emb1"] @ params["theta1"].T)
    e2 = alpha * jnp.tanh(params["emb2"] @ params["theta2"].T)
    adj_ref = jax.nn.sigmoid(e1 @ e2.T)
    adj_norm_ref = adj_ref / adj_ref.sum(axis=0, keepdims=True)
    recon_ref = x + (x @ params["gc_w"] + params["gc_b"]) @ adj_norm_ref
    num_ref = jnp.tanh(recon_ref[:, jnp.array(numeric_vars_pos)])
    cat_ref = jax.nn.sigmoid(recon_ref[:, jnp.array(cat_vars_pos)])
    x_hat_ref = jnp.concatenate([num_ref, cat_ref], axis=1)
    y_ref = x_hat_ref[:, jnp.array(vars_pos)] @ params["ph_w"] + params["ph_b"]
    y_masked_ref = (x[:, jnp.array(vars_pos)] @ (params["ph_w"] * adj_mask)
                    + params["ph_b"])

    for o in (out, out_auto):
        assert jnp.allclose(o["adj_mat"], adj_ref, atol=1e-4, rtol=1e-4)
        assert jnp.allclose(o["x_recon_num"], num_ref, atol=1e-4, rtol=1e-4)
        assert jnp.allclose(o["x_recon_cat"], cat_ref, atol=1e-4, rtol=1e-4)
        assert jnp.allclose(o["x_imputed"], x_hat_ref, atol=1e-4, rtol=1e-4)
        assert jnp.allclose(o["y_hat"], y_ref, atol=1e-4, rtol=1e-4)
    assert jnp.allclose(y_masked, y_masked_ref, atol=1e-4, rtol=1e-4)

    print("KERNEL_OK")
</pallas_src>

<mosaic_0001>
module attributes {stable_mosaic.version = 11 : i64} {
  func.func @_affine_act_kernel(%arg0: i32, %arg1: i32, %arg2: memref<16x8xf32, #tpu.memory_space<vmem>>, %arg3: memref<8x128xf32, #tpu.memory_space<vmem>>, %arg4: memref<1x128xf32, #tpu.memory_space<vmem>>, %arg5: memref<16x128xf32, #tpu.memory_space<vmem>>) attributes {dimension_semantics = [#tpu.dimension_semantics<parallel>, #tpu.dimension_semantics<parallel>], iteration_bounds = array<i64: 1, 2>, scalar_prefetch = 0 : i64, scratch_operands = 0 : i64, tpu.core_type = #tpu.core_type<tc>, window_params = [{transform_indices = @transform_0, window_bounds = array<i64: 16, 8>}, {transform_indices = @transform_1, window_bounds = array<i64: 8, 128>}, {transform_indices = @transform_2, window_bounds = array<i64: 1, 128>}, {transform_indices = @transform_3, window_bounds = array<i64: 16, 128>}]} {
    %c0 = arith.constant 0 : index
    %c0_0 = arith.constant 0 : index
    %0 = vector.load %arg2[%c0, %c0_0] : memref<16x8xf32, #tpu.memory_space<vmem>>, vector<16x8xf32>
    %c0_1 = arith.constant 0 : index
    %c0_2 = arith.constant 0 : index
    %1 = vector.load %arg3[%c0_1, %c0_2] : memref<8x128xf32, #tpu.memory_space<vmem>>, vector<8x128xf32>
    %cst = arith.constant dense<0.000000e+00> : vector<16x128xf32>
    %2 = tpu.matmul %0, %1, %cst {dimension_numbers = #tpu.dot_dimension_numbers<[1], [0], [0], [1], [0, 0, 1, 1], [], []>, precision = #tpu.contract_precision<fp32>} : vector<16x8xf32>, vector<8x128xf32>, vector<16x128xf32> -> vector<16x128xf32>
    %c0_3 = arith.constant 0 : index
    %c0_4 = arith.constant 0 : index
    %3 = vector.load %arg4[%c0_3, %c0_4] : memref<1x128xf32, #tpu.memory_space<vmem>>, vector<1x128xf32>
    %4 = vector.broadcast %3 : vector<1x128xf32> to vector<16x128xf32>
    %5 = arith.addf %2, %4 : vector<16x128xf32>
    %c0_5 = arith.constant 0 : index
    %c0_6 = arith.constant 0 : index
    %6 = vector.load %arg5[%c0_5, %c0_6] : memref<16x128xf32, #tpu.memory_space<vmem>>, vector<16x128xf32>
    tpu.vector_store %arg5[%c0_5, %c0_6], %5 {strides = array<i32>} : memref<16x128xf32, #tpu.memory_space<vmem>>, vector<16x128xf32>,
    return
  }
  func.func @transform_0(%arg0: i32, %arg1: i32) -> (i32, i32) {
    %c0_i32 = arith.constant 0 : i32
    %c0_i32_0 = arith.constant 0 : i32
    return %arg1, %c0_i32 : i32, i32
  }
  func.func @transform_1(%arg0: i32, %arg1: i32) -> (i32, i32) {
    %c0_i32 = arith.constant 0 : i32
    %c0_i32_0 = arith.constant 0 : i32
    return %c0_i32, %arg0 : i32, i32
  }
  func.func @transform_2(%arg0: i32, %arg1: i32) -> (i32, i32) {
    %c0_i32 = arith.constant 0 : i32
    %c0_i32_0 = arith.constant 0 : i32
    return %c0_i32, %arg0 : i32, i32
  }
  func.func @transform_3(%arg0: i32, %arg1: i32) -> (i32, i32) {
    %c0_i32 = arith.constant 0 : i32
    return %arg1, %arg0 : i32, i32
  }
}

module attributes {stable_mosaic.version = 11 : i64} {
  func.func @_affine_act_kernel(%arg0: i32, %arg1: i32, %arg2: memref<16x8xf32, #tpu.memory_space<vmem>>, %arg3: memref<8x128xf32, #tpu.memory_space<vmem>>, %arg4: memref<1x128xf32, #tpu.memory_space<vmem>>, %arg5: memref<16x128xf32, #tpu.memory_space<vmem>>) attributes {dimension_semantics = [#tpu.dimension_semantics<parallel>, #tpu.dimension_semantics<parallel>], iteration_bounds = array<i64: 1, 2>, scalar_prefetch = 0 : i64, scratch_operands = 0 : i64, tpu.core_type = #tpu.core_type<tc>, window_params = [{transform_indices = @transform_0, window_bounds = array<i64: 16, 8>}, {transform_indices = @transform_1, window_bounds = array<i64: 8, 128>}, {transform_indices = @transform_2, window_bounds = array<i64: 1, 128>}, {transform_indices = @transform_3, window_bounds = array<i64: 16, 128>}]} {
    %c0 = arith.constant 0 : index
    %c0_0 = arith.constant 0 : index
    %0 = vector.load %arg2[%c0, %c0_0] : memref<16x8xf32, #tpu.memory_space<vmem>>, vector<16x8xf32>
    %c0_1 = arith.constant 0 : index
    %c0_2 = arith.constant 0 : index
    %1 = vector.load %arg3[%c0_1, %c0_2] : memref<8x128xf32, #tpu.memory_space<vmem>>, vector<8x128xf32>
    %cst = arith.constant dense<0.000000e+00> : vector<16x128xf32>
    %2 = tpu.matmul %0, %1, %cst {dimension_numbers = #tpu.dot_dimension_numbers<[1], [0], [0], [1], [0, 0, 1, 1], [], []>, precision = #tpu.contract_precision<fp32>} : vector<16x8xf32>, vector<8x128xf32>, vector<16x128xf32> -> vector<16x128xf32>
    %c0_3 = arith.constant 0 : index
    %c0_4 = arith.constant 0 : index
    %3 = vector.load %arg4[%c0_3, %c0_4] : memref<1x128xf32, #tpu.memory_space<vmem>>, vector<1x128xf32>
    %4 = vector.broadcast %3 : vector<1x128xf32> to vector<16x128xf32>
    %5 = arith.addf %2, %4 : vector<16x128xf32>
    %c128_i32 = arith.constant 128 : i32
    %6 = arith.muli %arg0, %c128_i32 : i32
    %7 = tpu.iota {dimensions = array<i32: 1>} : vector<16x128xi32>
    %8 = vector.broadcast %6 : i32 to vector<16x128xi32>
    %9 = arith.addi %8, %7 : vector<16x128xi32>
    %cst_5 = arith.constant 0.000000e+00 : f32
    %10 = vector.broadcast %cst_5 : f32 to vector<16x128xf32>
    %11 = arith.subf %10, %5 : vector<16x128xf32>
    %12 = math.exp %11 : vector<16x128xf32>
    %cst_6 = arith.constant 1.000000e+00 : f32
    %13 = vector.broadcast %cst_6 : f32 to vector<16x128xf32>
    %14 = arith.addf %13, %12 : vector<16x128xf32>
    %cst_7 = arith.constant 1.000000e+00 : f32
    %15 = vector.broadcast %cst_7 : f32 to vector<16x128xf32>
    %16 = arith.divf %15, %14 : vector<16x128xf32>
    %c4_i32 = arith.constant 4 : i32
    %17 = vector.broadcast %c4_i32 : i32 to vector<16x128xi32>
    %18 = arith.cmpi slt, %9, %17 : vector<16x128xi32>
    %19 = math.tanh %5 : vector<16x128xf32>
    %20 = arith.select %18, %19, %16 : vector<16x128xi1>, vector<16x128xf32>
    %c0_8 = arith.constant 0 : index
    %c0_9 = arith.constant 0 : index
    %21 = vector.load %arg5[%c0_8, %c0_9] : memref<16x128xf32, #tpu.memory_space<vmem>>, vector<16x128xf32>
    tpu.vector_store %arg5[%c0_8, %c0_9], %20 {strides = array<i32>} : memref<16x128xf32, #tpu.memory_space<vmem>>, vector<16x128xf32>,
    return
  }
  func.func @transform_0(%arg0: i32, %arg1: i32) -> (i32, i32) {
    %c0_i32 = arith.constant 0 : i32
    %c0_i32_0 = arith.constant 0 : i32
    return %arg1, %c0_i32 : i32, i32
  }
  func.func @transform_1(%arg0: i32, %arg1: i32) -> (i32, i32) {
    %c0_i32 = arith.constant 0 : i32
    %c0_i32_0 = arith.constant 0 : i32
    return %c0_i32, %arg0 : i32, i32
  }
  func.func @transform_2(%arg0: i32, %arg1: i32) -> (i32, i32) {
    %c0_i32 = arith.constant 0 : i32
    %c0_i32_0 = arith.constant 0 : i32
    return %c0_i32, %arg0 : i32, i32
  }
  func.func @transform_3(%arg0: i32, %arg1: i32) -> (i32, i32) {
    %c0_i32 = arith.constant 0 : i32
    return %arg1, %arg0 : i32, i32
  }
}

</mosaic_0001>

<bundles_post_ra>
// kernel: forward.3
= control target key start
LH: loop header
LB: loop body
LE: loop exit
PB: predicated region body
PF: predicated region fallthrough
CT: control target
= control target key end

     0   :  { %s604_s12 = smov 0   ;;  %s606_s13 = smov 0   ;;  %s650_s0 = inlined_call_operand.vmem [shape: f32[32,8], index: 0, kind: input, shape index: {}]   ;;  %s651_s1 = inlined_call_operand.vmem [shape: f32[8,128], index: 1, kind: input, shape index: {}]   ;;  %s652_s2 = inlined_call_operand.vmem [shape: f32[1,128], index: 2, kind: input, shape index: {}]   ;;  %s653_s3 = inlined_call_operand.vmem [shape: f32[32,128], index: 3, kind: output, shape index: {}]  }
   0x1   :  { %s608_s14 = smov 0  }
   0x2 LB: > { %s22_s15 = sadd.s32 1, %s578_s13  ;;  %p526_p0 = scmp.ge.s32.totalorder %s582_s14, 1  ;;  %s582_s14 = sphi %s608_s14, %s13_s14   ;;  %s578_s13 = sphi %s606_s13, %s655_s13   ;;  %s574_s12 = sphi %s604_s12, %s654_s12  }
   0x3   : > { %p23_p1 = scmp.ge.s32.totalorder %s22_s15, 2  ;;  %p169_p2 = scmp.lt.s32.totalorder %s582_s14, 3 }
   0x5   : > { %s657_s15 = smov (%p23_p1, %s22_s15), 0  ;;  %p170_p3 = pnand %p526_p0, %p169_p2 }
   0x6   : > { %s527_s18 = sshll.u32 (!%p170_p3), %s574_s12, 1 }
   0x7   : > { %173 = sbr.rel (%p170_p3) target bundleno = 184 (0xb8), region = 32  ;;  %p204_p4 = scmp.lt.s32.totalorder (!%p170_p3), %s527_s18, 3 }
   0xc   : > { %v227_v0 = vld [vmem:[%s651_s1] sm:$0xff]  ;;  %s659_s18 = smov (!%p204_p4, %s527_s18), 3  ;;  %vm232_vm0 = vcmask 64512  }
   0xd   : > { %v254_v1 = vand.u32 4294901760, %v227_v0  ;;  %s528_s19 = sshll.u32 %s659_s18, 3  ;;  %v559_v22 = vld [vmem:[%s652_s2] ss:$0 sm:$0xff] }
   0xe   : > { %s207_s22 = scalar_lea.vmem %s650_s0, %s528_s19  ;;  %s223_s27 = scalar_lea.vmem %s653_s3, %s528_s19 }
   0xf   : > { %533 = vmatpush.msra.mxu2 %v254_v1  ;;  %v289_v2 = vsub.f32 %v227_v0, %v254_v1  ;;  %255 = vmatpush.msra.mxu0 %v254_v1  ;;  %v226_v4 = vld [vmem:[%s207_s22 + $0x8] sm:$0xff]  ;;  %v225_v6 = vld [vmem:[%s207_s22] sm:$0xff] }
  0x10   : > { %v237_v7 = vsel %vm232_vm0, %v226_v4, 0  ;;  %v234_v8 = vsel %vm232_vm0, %v225_v6, 0 }
  0x11   : > { %320 = vmatpush.msrb.mxu2 %v289_v2  ;;  %v290_v3 = vand.u32 4294901760, %v289_v2  ;;  %v264_v9 = vand.u32 4294901760, %v237_v7  ;;  %v256_v11 = vand.u32 4294901760, %v234_v8 }
  0x13   : > { %v291_v5 = vsub.f32 %v289_v2, %v290_v3  ;;  %380 = vmatpush.msrb.mxu0 %v290_v3  ;;  %v265_v12 = vsub.f32 %v237_v7, %v264_v9  ;;  %v257_v13 = vsub.f32 %v234_v8, %v256_v11 }
  0x15   : > { %v292_v10 = vand.u32 4294901760, %v291_v5  ;;  %v266_v14 = vand.u32 4294901760, %v265_v12  ;;  %v258_v15 = vand.u32 4294901760, %v257_v13 }
  0x17   : > { %534 = vmatpush.msra.mxu3 %v292_v10  ;;  %293 = vmatpush.msra.mxu1 %v292_v10  ;;  %v267_v16 = vsub.f32 %v265_v12, %v266_v14  ;;  %v259_v17 = vsub.f32 %v257_v13, %v258_v15 }
  0x18   : > { %299 = vmatmul.f32.vlgmr.msra.gmra.mxu3 %v264_v9  ;;  %295 = vmatmul.f32.vlgmr.msra.gmra.mxu1 %v256_v11 }
  0x19   : > { %348 = vmatpush.msrb.mxu3 %v254_v1  ;;  %406 = vmatpush.msrb.mxu1 %v254_v1  ;;  %v268_v18 = vand.u32 4294901760, %v267_v16  ;;  %v260_v19 = vand.u32 4294901760, %v259_v17 }
  0x1b   : > { %269 = vmatmul.f32.vlgmr.msra.gmra.mxu2 %v268_v18  ;;  %261 = vmatmul.f32.vlgmr.msra.gmra.mxu0 %v260_v19 }
  0x20   : > { %352 = vmatmul.f32.vlgmr.msrb.gmra.mxu3 %v258_v15  ;;  %408 = vmatmul.f32.vlgmr.msrb.gmra.mxu1 %v256_v11 }
  0x23   : > { %323 = vmatmul.f32.vlgmr.msrb.gmra.mxu2 %v257_v13  ;;  %382 = vmatmul.f32.vlgmr.msrb.gmra.mxu0 %v256_v11 }
  0x28   : > { %358 = vmatmul.f32.gmra.mxu3 %v266_v14  ;;  %412 = vmatmul.f32.gmra.mxu1 %v264_v9 }
  0x2b   : > { %328 = vmatmul.f32.gmra.mxu2 %v265_v12  ;;  %386 = vmatmul.f32.gmra.mxu0 %v264_v9 }
  0x95   : > { %v296_v24 = vpop.f32.mrf.mxu1 }
  0x98   : > { %v262_v21 = vpop.f32.mrf.mxu0 }
  0x99   : > { %v263_v25 = vadd.f32 %v559_v22, %v262_v21 }
  0x9b   : > { %v300_v20 = vpop.f32.mrf.mxu3  ;;  %v297_v26 = vadd.f32 %v296_v24, %v263_v25 }
  0x9d   : > { %v409_v31 = vpop.f32.mrf.mxu1 }
  0x9e   : > { %v270_v23 = vpop.f32.mrf.mxu2 }
  0x9f   : > { %v271_v32 = vadd.f32 %v559_v22, %v270_v23 }
  0xa0   : > { %v383_v29 = vpop.f32.mrf.mxu0 }
  0xa1   : > { %v301_v35 = vadd.f32 %v300_v20, %v271_v32 }
  0xa3   : > { %v353_v27 = vpop.f32.mrf.mxu3 }
  0xa5   : > { %v413_v42 = vpop.f32.mrf.mxu1 }
  0xa6   : > { %v324_v28 = vpop.f32.mrf.mxu2 }
  0xa7   : > { %v325_v30 = vadd.f32 %v324_v28, %v297_v26 }
  0xa8   : > { %v387_v40 = vpop.f32.mrf.mxu0 }
  0xa9   : > { %v354_v33 = vadd.f32 %v353_v27, %v325_v30 }
  0xab   : > { %v384_v34 = vadd.f32 %v383_v29, %v354_v33  ;;  %v359_v38 = vpop.f32.mrf.mxu3 }
  0xad   : > { %v410_v36 = vadd.f32 %v409_v31, %v384_v34 }
  0xae   : > { %v329_v37 = vpop.f32.mrf.mxu2 }
  0xaf   : > { %416 = vst [vmem:[%s223_s27] sm:$0xff] %v410_v36  ;;  %v330_v39 = vadd.f32 %v329_v37, %v301_v35 }
  0xb1   : > { %v360_v41 = vadd.f32 %v359_v38, %v330_v39 }
  0xb3   : > { %v388_v43 = vadd.f32 %v387_v40, %v360_v41 }
  0xb5   : > { %v414_v44 = vadd.f32 %v413_v42, %v388_v43 }
  0xb7   : > { %417 = vst [vmem:[%s223_s27 + $0x8] sm:$0xff] %v414_v44 }
  0xb8 PF: > { %s13_s14 = sadd.s32 1, %s582_s14   ;;  %s654_s12 = smov %s578_s13 }
  0xb9   : > { %p10_p5 = scmp.ge.s32.totalorder %s13_s14, 4   ;;  %s655_s13 = smov %s657_s15 }
  0xbb   :  { %12 = sbr.rel (!%p10_p5) target bundleno = 2 (0x2), region = 68 }

// kernel: forward.2
= control target key start
LH: loop header
LB: loop body
LE: loop exit
PB: predicated region body
PF: predicated region fallthrough
CT: control target
= control target key end

     0   :  { %s664_s12 = smov 0   ;;  %s666_s13 = smov 0   ;;  %s712_s0 = inlined_call_operand.vmem [shape: f32[32,8], index: 0, kind: input, shape index: {}]   ;;  %s713_s1 = inlined_call_operand.vmem [shape: f32[8,128], index: 1, kind: input, shape index: {}]   ;;  %s714_s2 = inlined_call_operand.vmem [shape: f32[1,128], index: 2, kind: input, shape index: {}]   ;;  %s715_s3 = inlined_call_operand.vmem [shape: f32[32,128], index: 3, kind: output, shape index: {}]  }
   0x1   :  { %s668_s14 = smov 0  }
   0x2 LB: > { %s22_s15 = sadd.s32 1, %s638_s13  ;;  %p574_p0 = scmp.ge.s32.totalorder %s642_s14, 1  ;;  %s642_s14 = sphi %s668_s14, %s13_s14   ;;  %s638_s13 = sphi %s666_s13, %s717_s13   ;;  %s634_s12 = sphi %s664_s12, %s716_s12  }
   0x3   : > { %p23_p1 = scmp.ge.s32.totalorder %s22_s15, 2  ;;  %p169_p2 = scmp.lt.s32.totalorder %s642_s14, 3 }
   0x5   : > { %s719_s15 = smov (%p23_p1, %s22_s15), 0  ;;  %p170_p3 = pnand %p574_p0, %p169_p2 }
   0x6   : > { %s575_s18 = sshll.u32 (!%p170_p3), %s634_s12, 1 }
   0x7   : > { %173 = sbr.rel (%p170_p3) target bundleno = 215 (0xd7), region = 32  ;;  %p204_p4 = scmp.lt.s32.totalorder (!%p170_p3), %s575_s18, 3 }
   0xc   : > { %v227_v0 = vld [vmem:[%s713_s1] sm:$0xff]  ;;  %s721_s18 = smov (!%p204_p4, %s575_s18), 3  ;;  %vm232_vm0 = vcmask 64512   ;;  %v417_v53 = vlaneseq }
   0xd   : > { %v254_v1 = vand.u32 4294901760, %v227_v0  ;;  %s576_s19 = sshll.u32 %s721_s18, 3  ;;  %v607_v22 = vld [vmem:[%s714_s2] ss:$0 sm:$0xff] }
   0xe   : > { %s207_s22 = scalar_lea.vmem %s712_s0, %s576_s19  ;;  %v418_v57 = vand.u32 127, %v417_v53  ;;  %s223_s27 = scalar_lea.vmem %s715_s3, %s576_s19 }
   0xf   : > { %581 = vmatpush.msra.mxu2 %v254_v1  ;;  %v289_v2 = vsub.f32 %v227_v0, %v254_v1  ;;  %255 = vmatpush.msra.mxu0 %v254_v1  ;;  %v226_v4 = vld [vmem:[%s207_s22 + $0x8] sm:$0xff]  ;;  %v225_v6 = vld [vmem:[%s207_s22] sm:$0xff] }
  0x10   : > { %v237_v7 = vsel %vm232_vm0, %v226_v4, 0  ;;  %v234_v8 = vsel %vm232_vm0, %v225_v6, 0  ;;  %vm459_vm4 = vcmp.lt.s32.totalorder %v418_v57, 4 }
  0x11   : > { %320 = vmatpush.msrb.mxu2 %v289_v2  ;;  %v290_v3 = vand.u32 4294901760, %v289_v2  ;;  %v264_v9 = vand.u32 4294901760, %v237_v7  ;;  %v256_v11 = vand.u32 4294901760, %v234_v8 }
  0x13   : > { %v291_v5 = vsub.f32 %v289_v2, %v290_v3  ;;  %380 = vmatpush.msrb.mxu0 %v290_v3  ;;  %v265_v12 = vsub.f32 %v237_v7, %v264_v9  ;;  %v257_v13 = vsub.f32 %v234_v8, %v256_v11 }
  0x15   : > { %v292_v10 = vand.u32 4294901760, %v291_v5  ;;  %v266_v14 = vand.u32 4294901760, %v265_v12  ;;  %v258_v15 = vand.u32 4294901760, %v257_v13 }
  0x17   : > { %582 = vmatpush.msra.mxu3 %v292_v10  ;;  %293 = vmatpush.msra.mxu1 %v292_v10  ;;  %v267_v16 = vsub.f32 %v265_v12, %v266_v14  ;;  %v259_v17 = vsub.f32 %v257_v13, %v258_v15 }
  0x18   : > { %299 = vmatmul.f32.vlgmr.msra.gmra.mxu3 %v264_v9  ;;  %295 = vmatmul.f32.vlgmr.msra.gmra.mxu1 %v256_v11 }
  0x19   : > { %348 = vmatpush.msrb.mxu3 %v254_v1  ;;  %406 = vmatpush.msrb.mxu1 %v254_v1  ;;  %v268_v18 = vand.u32 4294901760, %v267_v16  ;;  %v260_v19 = vand.u32 4294901760, %v259_v17 }
  0x1b   : > { %269 = vmatmul.f32.vlgmr.msra.gmra.mxu2 %v268_v18  ;;  %261 = vmatmul.f32.vlgmr.msra.gmra.mxu0 %v260_v19 }
  0x20   : > { %352 = vmatmul.f32.vlgmr.msrb.gmra.mxu3 %v258_v15  ;;  %408 = vmatmul.f32.vlgmr.msrb.gmra.mxu1 %v256_v11 }
  0x23   : > { %323 = vmatmul.f32.vlgmr.msrb.gmra.mxu2 %v257_v13  ;;  %382 = vmatmul.f32.vlgmr.msrb.gmra.mxu0 %v256_v11 }
  0x28   : > { %358 = vmatmul.f32.gmra.mxu3 %v266_v14  ;;  %412 = vmatmul.f32.gmra.mxu1 %v264_v9 }
  0x2b   : > { %328 = vmatmul.f32.gmra.mxu2 %v265_v12  ;;  %386 = vmatmul.f32.gmra.mxu0 %v264_v9 }
  0x95   : > { %v296_v24 = vpop.f32.mrf.mxu1 }
  0x98   : > { %v262_v21 = vpop.f32.mrf.mxu0 }
  0x99   : > { %v263_v25 = vadd.f32 %v607_v22, %v262_v21 }
  0x9b   : > { %v300_v20 = vpop.f32.mrf.mxu3  ;;  %v297_v26 = vadd.f32 %v296_v24, %v263_v25 }
  0x9d   : > { %v409_v31 = vpop.f32.mrf.mxu1 }
  0x9e   : > { %v270_v23 = vpop.f32.mrf.mxu2 }
  0x9f   : > { %v271_v32 = vadd.f32 %v607_v22, %v270_v23 }
  0xa0   : > { %v383_v29 = vpop.f32.mrf.mxu0 }
  0xa1   : > { %v301_v35 = vadd.f32 %v300_v20, %v271_v32 }
  0xa3   : > { %v353_v27 = vpop.f32.mrf.mxu3 }
  0xa5   : > { %v413_v44 = vpop.f32.mrf.mxu1 }
  0xa6   : > { %v324_v28 = vpop.f32.mrf.mxu2 }
  0xa7   : > { %v325_v30 = vadd.f32 %v324_v28, %v297_v26 }
  0xa8   : > { %v387_v41 = vpop.f32.mrf.mxu0 }
  0xa9   : > { %v354_v33 = vadd.f32 %v353_v27, %v325_v30 }
  0xab   : > { %v384_v34 = vadd.f32 %v383_v29, %v354_v33  ;;  %v359_v38 = vpop.f32.mrf.mxu3 }
  0xad   : > { %v410_v36 = vadd.f32 %v409_v31, %v384_v34 }
  0xae   : > { %v329_v37 = vpop.f32.mrf.mxu2 }
  0xaf   : > { %v421_v39 = vsub.f32 0.0, %v410_v36  ;;  %v330_v40 = vadd.f32 %v329_v37, %v301_v35 }
  0xb1   : > { %v423_v42 = vmul.f32 1.442695, %v421_v39  ;;  %v360_v43 = vadd.f32 %v359_v38, %v330_v40 }
  0xb3   : > { %608 = vpow2.f32 %v423_v42  ;;  %v388_v45 = vadd.f32 %v387_v41, %v360_v43 }
  0xb5   : > { %v414_v46 = vadd.f32 %v413_v44, %v388_v45 }
  0xb7   : > { %v422_v47 = vsub.f32 0.0, %v414_v46 }
  0xb9   : > { %v609_v48 = vpop.eup %608  ;;  %v425_v49 = vmul.f32 1.442695, %v422_v47 }
  0xba   : > { %v427_v50 = vadd.f32 1.0, %v609_v48 }
  0xbb   : > { %610 = vpow2.f32 %v425_v49 }
  0xbc   : > { %612 = vrcp.f32 %v427_v50  ;;  %v440_v58 = vand.u32 2147483648, %v427_v50  ;;  %v438_v60 = vand.u32 2147483647, %v427_v50  ;;  %vm434_vm2 = vweird.f32 %v427_v50 }
  0xbe   : > { %v441_v63 = vor.u32 1.1754944e-38, %v440_v58  ;;  %vm439_vm5 = vcmp.eq.f32.partialorder %v438_v60, 8.507059e+37 }
  0xc1   : > { %v611_v51 = vpop.eup %610 }
  0xc2   : > { %v613_v52 = vpop.eup %612  ;;  %v428_v54 = vadd.f32 1.0, %v611_v51 }
  0xc3   : > { %v430_v55 = vmul.f32 %v613_v52, %v427_v50  ;;  %vm435_vm1 = vweird.f32 %v613_v52 }
  0xc4   : > { %614 = vrcp.f32 %v428_v54  ;;  %vm436_vm3 = vmor %vm434_vm2, %vm435_vm1  ;;  %v455_v6 = vand.u32 2147483648, %v428_v54  ;;  %v453_v8 = vand.u32 2147483647, %v428_v54  ;;  %vm449_vm7 = vweird.f32 %v428_v54 }
  0xc5   : > { %v431_v56 = vsub.f32 1.0, %v430_v55  ;;  %616 = vtanh.f32 %v410_v36 }
  0xc6   : > { %618 = vtanh.f32 %v414_v46  ;;  %v456_v10 = vor.u32 1.1754944e-38, %v455_v6  ;;  %vm454_vm9 = vcmp.eq.f32.partialorder %v453_v8, 8.507059e+37 }
  0xc7   : > { %v432_v59 = vmul.f32 %v613_v52, %v431_v56 }
  0xc9   : > { %v433_v61 = vadd.f32 %v613_v52, %v432_v59 }
  0xca   : > { %v615_v62 = vpop.eup %614 }
  0xcb   : > { %v437_v0 = vsel %vm436_vm3, %v613_v52, %v433_v61  ;;  %v445_v1 = vmul.f32 %v615_v62, %v428_v54  ;;  %v617_v2 = vpop.eup %616  ;;  %vm450_vm6 = vweird.f32 %v615_v62 }
  0xcc   : > { %v442_v3 = vsel %vm439_vm5, %v441_v63, %v437_v0  ;;  %vm451_vm8 = vmor %vm449_vm7, %vm450_vm6  ;;  %v619_v12 = vpop.eup %618 }
  0xcd   : > { %v462_v4 = vsel %vm459_vm4, %v617_v2, %v442_v3  ;;  %v446_v5 = vsub.f32 1.0, %v445_v1 }
  0xce   : > { %464 = vst [vmem:[%s223_s27] sm:$0xff] %v462_v4 }
  0xcf   : > { %v447_v7 = vmul.f32 %v615_v62, %v446_v5 }
  0xd1   : > { %v448_v9 = vadd.f32 %v615_v62, %v447_v7 }
  0xd3   : > { %v452_v11 = vsel %vm451_vm8, %v615_v62, %v448_v9 }
  0xd4   : > { %v457_v13 = vsel %vm454_vm9, %v456_v10, %v452_v11 }
  0xd5   : > { %v463_v14 = vsel %vm459_vm4, %v619_v12, %v457_v13 }
  0xd6   : > { %465 = vst [vmem:[%s223_s27 + $0x8] sm:$0xff] %v463_v14 }
  0xd7 PF: > { %s13_s14 = sadd.s32 1, %s642_s14   ;;  %s716_s12 = smov %s638_s13 }
  0xd8   : > { %p10_p5 = scmp.ge.s32.totalorder %s13_s14, 4   ;;  %s717_s13 = smov %s719_s15 }
  0xda   :  { %12 = sbr.rel (!%p10_p5) target bundleno = 2 (0x2), region = 68 }

</bundles_post_ra>
